<compile_context>
chip_gen: v7x
topology: tpu7x:2x2x1
jax: 0.10.0
libtpu: 0.0.40
codegen_flags: <defaults>
</compile_context>

<pallas_src>
import functools

import jax
import jax.numpy as jnp
import numpy as np
from jax.experimental import pallas as pl
from jax.experimental.pallas import tpu as pltpu

LEAKY_SLOPE = 0.01
BN_EPS = 1e-5


def _leaky(v):
    return jnp.where(v >= 0, v, LEAKY_SLOPE * v)


def _net0_kernel(x_ref, adj_ref, wg_ref, gamma_ref, beta_ref,
                 w1_ref, b1_ref, wl_ref, bl_ref, out_ref, z_acc,
                 *, batch_size, num_features, num_nodes):
    """One grid step of the fused Net0 forward.

    Grid axis 0 tiles the contraction dimension of z = x_row @ A_hat^T.
      x_ref   : (1, TK)  bf16   row tile of node features
      adj_ref : (TK, N)  bf16   row tile of A_hat^T (== column tile of A_hat)
      z_acc   : (1, N)   f32    resident accumulator (VMEM scratch)
    Everything after the aggregation runs once, in the last grid step, on the
    lane-dense (C, N) activation.
    """
    k = pl.program_id(0)

    @pl.when(k == 0)
    def _():
        z_acc[...] = jnp.zeros_like(z_acc)

    # Only large op: streamed MXU aggregation, bf16 inputs, f32 accumulation.
    z_acc[...] += jnp.dot(x_ref[...], adj_ref[...],
                          preferred_element_type=jnp.float32)       # (1, N)

    @pl.when(k == pl.num_programs(0) - 1)
    def _():
        z = z_acc[...]                                   # (1, N) == (A_hat @ x)^T
        # GCNConv weight (in_channels=1): h^T = w_gcn^T * z, lane-dense (C, N).
        h = wg_ref[...] * z                              # (C,1)*(1,N) -> (C,N)
        # NOTE: the GCN bias is intentionally NOT added: a per-channel constant
        # added before *training-mode* BatchNorm is cancelled exactly by the
        # batch-mean subtraction below (this does NOT hold for eval-mode BN).

        # BatchNorm1d (training fwd, biased variance) in one pass over h.
        inv_n = 1.0 / float(num_nodes)
        mean = jnp.sum(h, axis=-1, keepdims=True) * inv_n            # (C, 1)
        ex2 = jnp.sum(h * h, axis=-1, keepdims=True) * inv_n         # (C, 1)
        var = jnp.maximum(ex2 - mean * mean, 0.0)                    # guard cancellation
        hbn = (h - mean) * jax.lax.rsqrt(var + BN_EPS)
        hbn = _leaky(hbn * gamma_ref[...] + beta_ref[...])           # (C, N)

        # lin1times1: Linear(C -> 1) + leaky == C-sublane reduce (VPU/XLU).
        y = jnp.sum(hbn * w1_ref[...], axis=0, keepdims=True) + b1_ref[...]
        y = _leaky(y)                                                # (1, N)

        # lin1: Linear(F -> 1) per graph.  Each graph is F contiguous lanes;
        # reduce them with an iota-built 0/1 selector on the otherwise-idle
        # MXU -> output stays lane-dense (1, B).  No (N, B) HBM traffic.
        yw = y * wl_ref[...]                             # wl[0, n] = w_lin1[n % F]
        n_ids = jax.lax.broadcasted_iota(jnp.int32, (num_nodes, batch_size), 0)
        b_ids = jax.lax.broadcasted_iota(jnp.int32, (num_nodes, batch_size), 1)
        sel = jnp.logical_and(n_ids >= b_ids * num_features,
                              n_ids < (b_ids + 1) * num_features)
        o = jnp.dot(yw, sel.astype(jnp.float32),
                    preferred_element_type=jnp.float32) + bl_ref[...]
        out_ref[...] = _leaky(o)                         # lane-dense (1, B)


def _vmem_limit_bytes():
    """<= 7/8 of physical VMEM, capped at 100 MiB.
    v5e/v6e (128 MiB physical) -> 100 MiB; v7x (64 MiB) -> ~56 MiB."""
    try:
        cap = int(pltpu.get_tpu_info().vmem_capacity_bytes)
    except Exception:
        cap = 64 * 1024 * 1024
    return int(min(cap * 7 // 8, 100 * 1024 * 1024))


def _pick_contraction_tile(n):
    """Tile height of the A_hat^T row tile (contraction axis of the dot)."""
    if n <= 2048 or n % 512 != 0:
        # Whole axis in one block: bf16 adjacency <= 2048^2 * 2 = 8 MiB.
        # TODO(synk): pad / mask a ragged tail so large non-512-divisible N can
        # still be tiled instead of falling back to a single block.
        return n
    # >=512-row tiles reach ~85% of HBM roofline; 512*N*2 bytes per buffer,
    # double-buffered (~16 MiB at N=8192) fits v7x's 64 MiB VMEM as well.
    return 512


def net0_forward(x, adj_norm, params, batch_size, num_features):
    """x: (N, 1) node features; adj_norm: (N, N) dense normalized adjacency."""
    N = x.shape[0]
    C = params["w_gcn"].shape[1]
    assert N == batch_size * num_features

    tk = _pick_contraction_tile(N)
    steps = N // tk

    # Lane-dense, bf16 copies of the only large operands.  The adjacency is
    # passed transposed so the kernel's x_row @ adj_t equals (A_hat @ x)^T even
    # for a non-symmetric (directed) A_hat.
    x_row = x.reshape(1, N).astype(jnp.bfloat16)
    adj_t = jnp.asarray(adj_norm).T.astype(jnp.bfloat16)

    # lin1 weight tiled once per graph along lanes: wl[0, n] = w_lin1[n % F].
    wl_row = jnp.tile(params["w_lin1"].reshape(1, num_features),
                      (1, batch_size)).astype(jnp.float32)           # (1, N)

    kernel = functools.partial(_net0_kernel,
                               batch_size=batch_size,
                               num_features=num_features,
                               num_nodes=N)

    const = lambda k: (0, 0)  # resident parameter / output blocks
    grid_spec = pltpu.PrefetchScalarGridSpec(
        num_scalar_prefetch=0,
        grid=(steps,),
        in_specs=[
            pl.BlockSpec((1, tk), lambda k: (0, k)),    # x row tile
            pl.BlockSpec((tk, N), lambda k: (k, 0)),    # A_hat^T row tile
            pl.BlockSpec((C, 1), const),                # w_gcn^T
            pl.BlockSpec((C, 1), const),                # bn gamma
            pl.BlockSpec((C, 1), const),                # bn beta
            pl.BlockSpec((C, 1), const),                # lin1times1 weight
            pl.BlockSpec((1, 1), const),                # lin1times1 bias
            pl.BlockSpec((1, N), const),                # tiled lin1 weight
            pl.BlockSpec((1, 1), const),                # lin1 bias
        ],
        out_specs=pl.BlockSpec((1, batch_size), const),
        scratch_shapes=[pltpu.VMEM((1, N), jnp.float32)],
    )

    out_row = pl.pallas_call(
        kernel,
        out_shape=jax.ShapeDtypeStruct((1, batch_size), jnp.float32),
        grid_spec=grid_spec,
        compiler_params=pltpu.CompilerParams(
            # The grid axis is a contraction with a resident accumulator.
            # TODO(synk): to shard it across v7x's 2 TensorCores mark it
            # "parallel" and combine per-core z partials via VMEM_SHARED/CMEM.
            dimension_semantics=("arbitrary",),
            vmem_limit_bytes=_vmem_limit_bytes(),
        ),
    )(
        x_row,                                           # (1, N) bf16
        adj_t,                                           # (N, N) bf16
        params["w_gcn"].reshape(C, 1).astype(jnp.float32),
        params["bn_gamma"].reshape(C, 1).astype(jnp.float32),
        params["bn_beta"].reshape(C, 1).astype(jnp.float32),
        params["w_1t1"].reshape(C, 1).astype(jnp.float32),
        params["b_1t1"].reshape(1, 1).astype(jnp.float32),
        wl_row,                                          # (1, N)
        params["b_lin1"].reshape(1, 1).astype(jnp.float32),
    )
    return out_row.reshape(batch_size, 1)


def gcn_normalized_adj(edge_index, num_nodes):
    """Dense D^-1/2 (A + I) D^-1/2 with unit edge weights (GCNConv default)."""
    src, dst = edge_index
    a = np.zeros((num_nodes, num_nodes), dtype=np.float32)
    a[dst, src] = 1.0                              # message flows source -> target
    a = a + np.eye(num_nodes, dtype=np.float32)    # add self loops
    deg = a.sum(axis=1)
    dinv = 1.0 / np.sqrt(np.maximum(deg, 1e-12))
    return jnp.asarray(dinv[:, None] * a * dinv[None, :])


def reference_forward(x, adj_norm, params, batch_size, num_features):
    """Pure-JAX reference of the PyTorch math (correctness check)."""
    C = params["w_gcn"].shape[1]
    h = adj_norm @ (x @ params["w_gcn"]) + params["b_gcn"][None, :]
    mean = h.mean(axis=0, keepdims=True)
    var = ((h - mean) ** 2).mean(axis=0, keepdims=True)
    h = (h - mean) / jnp.sqrt(var + BN_EPS)
    h = h * params["bn_gamma"][None, :] + params["bn_beta"][None, :]
    h = _leaky(h)
    y = _leaky(h @ params["w_1t1"].reshape(C, 1) + params["b_1t1"])   # (N, 1)
    y = y.reshape(batch_size, num_features)
    out = _leaky(y @ params["w_lin1"].T + params["b_lin1"])           # (B, 1)
    return out


if __name__ == "__main__":
    # Small shapes consistent with the module: B=2 graphs-worth of rows,
    # num_features F=8 nodes per graph, out_channels C=5.
    B, F, C = 2, 8, 5
    N = B * F

    key = jax.random.PRNGKey(0)
    k_x, k_w, k_b, k_w1, k_b1, k_wl, k_bl = jax.random.split(key, 7)

    # Node features: [N, 1] (GCNConv in_channels=1).
    x = jax.random.normal(k_x, (N, 1), dtype=jnp.float32)

    # Deterministic symmetric ring graph over N nodes.
    src = np.concatenate([np.arange(N), (np.arange(N) + 1) % N])
    dst = np.concatenate([(np.arange(N) + 1) % N, np.arange(N)])
    edge_index = np.stack([src, dst])
    adj_norm = gcn_normalized_adj(edge_index, N)

    params = {
        "w_gcn": 0.3 * jax.random.normal(k_w, (1, C), dtype=jnp.float32),
        "b_gcn": 0.1 * jax.random.normal(k_b, (C,), dtype=jnp.float32),
        "bn_gamma": jnp.ones((C,), dtype=jnp.float32),   # BatchNorm1d init
        "bn_beta": jnp.zeros((C,), dtype=jnp.float32),
        "w_1t1": 0.3 * jax.random.normal(k_w1, (1, C), dtype=jnp.float32),   # Linear(C,1).weight
        "b_1t1": 0.1 * jax.random.normal(k_b1, (1,), dtype=jnp.float32),
        "w_lin1": 0.3 * jax.random.normal(k_wl, (1, F), dtype=jnp.float32),  # Linear(F,1).weight
        "b_lin1": 0.1 * jax.random.normal(k_bl, (1,), dtype=jnp.float32),
    }

    out = net0_forward(x, adj_norm, params, B, F)
    out = jax.block_until_ready(out)

    # Tight check: identical math on the same bf16-quantized adjacency/features.
    x_q = x.astype(jnp.bfloat16).astype(jnp.float32)
    adj_q = adj_norm.astype(jnp.bfloat16).astype(jnp.float32)
    ref_q = reference_forward(x_q, adj_q, params, B, F)
    np.testing.assert_allclose(np.asarray(out), np.asarray(ref_q),
                               rtol=1e-3, atol=1e-4)

    # Loose check against the exact f32 module semantics (bf16-adjacency slack).
    ref = reference_forward(x, adj_norm, params, B, F)
    np.testing.assert_allclose(np.asarray(out), np.asarray(ref),
                               rtol=5e-2, atol=1e-2)

    print("KERNEL_OK")
</pallas_src>

<mosaic_0001>
module attributes {stable_mosaic.version = 11 : i64} {
  func.func @_net0_kernel(%arg0: i32, %arg1: memref<1x16xbf16, #tpu.memory_space<vmem>>, %arg2: memref<16x16xbf16, #tpu.memory_space<vmem>>, %arg3: memref<5x1xf32, #tpu.memory_space<vmem>>, %arg4: memref<5x1xf32, #tpu.memory_space<vmem>>, %arg5: memref<5x1xf32, #tpu.memory_space<vmem>>, %arg6: memref<5x1xf32, #tpu.memory_space<vmem>>, %arg7: memref<1x1xf32, #tpu.memory_space<vmem>>, %arg8: memref<1x16xf32, #tpu.memory_space<vmem>>, %arg9: memref<1x1xf32, #tpu.memory_space<vmem>>, %arg10: memref<1x2xf32, #tpu.memory_space<vmem>>, %arg11: memref<1x16xf32, #tpu.memory_space<vmem>>) attributes {dimension_semantics = [#tpu.dimension_semantics<arbitrary>], iteration_bounds = array<i64: 1>, scalar_prefetch = 0 : i64, scratch_operands = 1 : i64, tpu.core_type = #tpu.core_type<tc>, window_params = [{transform_indices = @transform_0, window_bounds = array<i64: 1, 16>}, {transform_indices = @transform_1, window_bounds = array<i64: 16, 16>}, {pipeline_mode = #tpu.pipeline_mode<synchronous>, transform_indices = @transform_2, window_bounds = array<i64: 5, 1>}, {pipeline_mode = #tpu.pipeline_mode<synchronous>, transform_indices = @transform_3, window_bounds = array<i64: 5, 1>}, {pipeline_mode = #tpu.pipeline_mode<synchronous>, transform_indices = @transform_4, window_bounds = array<i64: 5, 1>}, {pipeline_mode = #tpu.pipeline_mode<synchronous>, transform_indices = @transform_5, window_bounds = array<i64: 5, 1>}, {pipeline_mode = #tpu.pipeline_mode<synchronous>, transform_indices = @transform_6, window_bounds = array<i64: 1, 1>}, {pipeline_mode = #tpu.pipeline_mode<synchronous>, transform_indices = @transform_7, window_bounds = array<i64: 1, 16>}, {pipeline_mode = #tpu.pipeline_mode<synchronous>, transform_indices = @transform_8, window_bounds = array<i64: 1, 1>}, {pipeline_mode = #tpu.pipeline_mode<synchronous>, transform_indices = @transform_9, window_bounds = array<i64: 1, 2>}]} {
    %c0_i32 = arith.constant 0 : i32
    %0 = arith.cmpi eq, %arg0, %c0_i32 : i32
    %1 = arith.extui %0 : i1 to i32
    %c0_i32_0 = arith.constant 0 : i32
    %2 = arith.cmpi ne, %1, %c0_i32_0 : i32
    scf.if %2 {
      %cst_10 = arith.constant 0.000000e+00 : f32
      %12 = vector.broadcast %cst_10 : f32 to vector<1x16xf32>
      %c0_11 = arith.constant 0 : index
      %c0_12 = arith.constant 0 : index
      %13 = vector.load %arg11[%c0_11, %c0_12] : memref<1x16xf32, #tpu.memory_space<vmem>>, vector<1x16xf32>
      tpu.vector_store %arg11[%c0_11, %c0_12], %12 {strides = array<i32>} : memref<1x16xf32, #tpu.memory_space<vmem>>, vector<1x16xf32>,
    } else {
    }
    %c0 = arith.constant 0 : index
    %c0_1 = arith.constant 0 : index
    %3 = vector.load %arg11[%c0, %c0_1] : memref<1x16xf32, #tpu.memory_space<vmem>>, vector<1x16xf32>
    %c0_2 = arith.constant 0 : index
    %c0_3 = arith.constant 0 : index
    %4 = vector.load %arg1[%c0_2, %c0_3] : memref<1x16xbf16, #tpu.memory_space<vmem>>, vector<1x16xbf16>
    %c0_4 = arith.constant 0 : index
    %c0_5 = arith.constant 0 : index
    %5 = vector.load %arg2[%c0_4, %c0_5] : memref<16x16xbf16, #tpu.memory_space<vmem>>, vector<16x16xbf16>
    %cst = arith.constant dense<0.000000e+00> : vector<1x16xf32>
    %6 = tpu.matmul %4, %5, %cst {dimension_numbers = #tpu.dot_dimension_numbers<[1], [0], [0], [1], [0, 0, 1, 1], [], []>} : vector<1x16xbf16>, vector<16x16xbf16>, vector<1x16xf32> -> vector<1x16xf32>
    %7 = arith.addf %3, %6 : vector<1x16xf32>
    %c0_6 = arith.constant 0 : index
    %c0_7 = arith.constant 0 : index
    %8 = vector.load %arg11[%c0_6, %c0_7] : memref<1x16xf32, #tpu.memory_space<vmem>>, vector<1x16xf32>
    tpu.vector_store %arg11[%c0_6, %c0_7], %7 {strides = array<i32>} : memref<1x16xf32, #tpu.memory_space<vmem>>, vector<1x16xf32>,
    %c0_i32_8 = arith.constant 0 : i32
    %9 = arith.cmpi eq, %arg0, %c0_i32_8 : i32
    %10 = arith.extui %9 : i1 to i32
    %c0_i32_9 = arith.constant 0 : i32
    %11 = arith.cmpi ne, %10, %c0_i32_9 : i32
    scf.if %11 {
      %c0_10 = arith.constant 0 : index
      %c0_11 = arith.constant 0 : index
      %12 = vector.load %arg11[%c0_10, %c0_11] : memref<1x16xf32, #tpu.memory_space<vmem>>, vector<1x16xf32>
      %c0_12 = arith.constant 0 : index
      %c0_13 = arith.constant 0 : index
      %13 = vector.load %arg3[%c0_12, %c0_13] : memref<5x1xf32, #tpu.memory_space<vmem>>, vector<5x1xf32>
      %14 = vector.broadcast %13 : vector<5x1xf32> to vector<5x16xf32>
      %15 = vector.broadcast %12 : vector<1x16xf32> to vector<5x16xf32>
      %16 = arith.mulf %14, %15 : vector<5x16xf32>
      %cst_14 = arith.constant dense<0.000000e+00> : vector<5xf32>
      %17 = vector.multi_reduction <add>, %16, %cst_14 [1] : vector<5x16xf32> to vector<5xf32>
      %18 = vector.shape_cast %17 : vector<5xf32> to vector<5x1xf32>
      %cst_15 = arith.constant 6.250000e-02 : f32
      %19 = vector.broadcast %cst_15 : f32 to vector<5x1xf32>
      %20 = arith.mulf %18, %19 : vector<5x1xf32>
      %21 = arith.mulf %16, %16 : vector<5x16xf32>
      %cst_16 = arith.constant dense<0.000000e+00> : vector<5xf32>
      %22 = vector.multi_reduction <add>, %21, %cst_16 [1] : vector<5x16xf32> to vector<5xf32>
      %23 = vector.shape_cast %22 : vector<5xf32> to vector<5x1xf32>
      %cst_17 = arith.constant 6.250000e-02 : f32
      %24 = vector.broadcast %cst_17 : f32 to vector<5x1xf32>
      %25 = arith.mulf %23, %24 : vector<5x1xf32>
      %26 = arith.mulf %20, %20 : vector<5x1xf32>
      %27 = arith.subf %25, %26 : vector<5x1xf32>
      %cst_18 = arith.constant 0.000000e+00 : f32
      %28 = vector.broadcast %cst_18 : f32 to vector<5x1xf32>
      %29 = arith.maximumf %27, %28 : vector<5x1xf32>
      %30 = vector.broadcast %20 : vector<5x1xf32> to vector<5x16xf32>
      %31 = arith.subf %16, %30 : vector<5x16xf32>
      %cst_19 = arith.constant 9.99999974E-6 : f32
      %32 = vector.broadcast %cst_19 : f32 to vector<5x1xf32>
      %33 = arith.addf %29, %32 : vector<5x1xf32>
      %34 = math.rsqrt %33 : vector<5x1xf32>
      %35 = vector.broadcast %34 : vector<5x1xf32> to vector<5x16xf32>
      %36 = arith.mulf %31, %35 : vector<5x16xf32>
      %c0_20 = arith.constant 0 : index
      %c0_21 = arith.constant 0 : index
      %37 = vector.load %arg4[%c0_20, %c0_21] : memref<5x1xf32, #tpu.memory_space<vmem>>, vector<5x1xf32>
      %38 = vector.broadcast %37 : vector<5x1xf32> to vector<5x16xf32>
      %39 = arith.mulf %36, %38 : vector<5x16xf32>
      %c0_22 = arith.constant 0 : index
      %c0_23 = arith.constant 0 : index
      %40 = vector.load %arg5[%c0_22, %c0_23] : memref<5x1xf32, #tpu.memory_space<vmem>>, vector<5x1xf32>
      %41 = vector.broadcast %40 : vector<5x1xf32> to vector<5x16xf32>
      %42 = arith.addf %39, %41 : vector<5x16xf32>
      %cst_24 = arith.constant 0.000000e+00 : f32
      %43 = vector.broadcast %cst_24 : f32 to vector<5x16xf32>
      %44 = arith.cmpf oge, %42, %43 : vector<5x16xf32>
      %cst_25 = arith.constant 0.00999999977 : f32
      %45 = vector.broadcast %cst_25 : f32 to vector<5x16xf32>
      %46 = arith.mulf %45, %42 : vector<5x16xf32>
      %47 = arith.select %44, %42, %46 : vector<5x16xi1>, vector<5x16xf32>
      %c0_26 = arith.constant 0 : index
      %c0_27 = arith.constant 0 : index
      %48 = vector.load %arg6[%c0_26, %c0_27] : memref<5x1xf32, #tpu.memory_space<vmem>>, vector<5x1xf32>
      %49 = vector.broadcast %48 : vector<5x1xf32> to vector<5x16xf32>
      %50 = arith.mulf %47, %49 : vector<5x16xf32>
      %cst_28 = arith.constant dense<0.000000e+00> : vector<16xf32>
      %51 = vector.multi_reduction <add>, %50, %cst_28 [0] : vector<5x16xf32> to vector<16xf32>
      %52 = vector.shape_cast %51 : vector<16xf32> to vector<1x16xf32>
      %c0_29 = arith.constant 0 : index
      %c0_30 = arith.constant 0 : index
      %53 = vector.load %arg7[%c0_29, %c0_30] : memref<1x1xf32, #tpu.memory_space<vmem>>, vector<1x1xf32>
      %54 = vector.broadcast %53 : vector<1x1xf32> to vector<1x16xf32>
      %55 = arith.addf %52, %54 : vector<1x16xf32>
      %cst_31 = arith.constant 0.000000e+00 : f32
      %56 = vector.broadcast %cst_31 : f32 to vector<1x16xf32>
      %57 = arith.cmpf oge, %55, %56 : vector<1x16xf32>
      %cst_32 = arith.constant 0.00999999977 : f32
      %58 = vector.broadcast %cst_32 : f32 to vector<1x16xf32>
      %59 = arith.mulf %58, %55 : vector<1x16xf32>
      %60 = arith.select %57, %55, %59 : vector<1x16xi1>, vector<1x16xf32>
      %c0_33 = arith.constant 0 : index
      %c0_34 = arith.constant 0 : index
      %61 = vector.load %arg8[%c0_33, %c0_34] : memref<1x16xf32, #tpu.memory_space<vmem>>, vector<1x16xf32>
      %62 = arith.mulf %60, %61 : vector<1x16xf32>
      %63 = tpu.iota {dimensions = array<i32: 0>} : vector<16x2xi32>
      %64 = tpu.iota {dimensions = array<i32: 1>} : vector<16x2xi32>
      %c8_i32 = arith.constant 8 : i32
      %65 = vector.broadcast %c8_i32 : i32 to vector<16x2xi32>
      %66 = arith.muli %64, %65 : vector<16x2xi32>
      %67 = arith.cmpi sge, %63, %66 : vector<16x2xi32>
      %c1_i32 = arith.constant 1 : i32
      %68 = vector.broadcast %c1_i32 : i32 to vector<16x2xi32>
      %69 = arith.addi %64, %68 : vector<16x2xi32>
      %c8_i32_35 = arith.constant 8 : i32
      %70 = vector.broadcast %c8_i32_35 : i32 to vector<16x2xi32>
      %71 = arith.muli %69, %70 : vector<16x2xi32>
      %72 = arith.cmpi slt, %63, %71 : vector<16x2xi32>
      %73 = arith.andi %67, %72 : vector<16x2xi1>
      %74 = arith.extui %73 : vector<16x2xi1> to vector<16x2xi32>
      %75 = arith.sitofp %74 : vector<16x2xi32> to vector<16x2xf32>
      %cst_36 = arith.constant dense<0.000000e+00> : vector<1x2xf32>
      %76 = tpu.matmul %62, %75, %cst_36 {dimension_numbers = #tpu.dot_dimension_numbers<[1], [0], [0], [1], [0, 0, 1, 1], [], []>} : vector<1x16xf32>, vector<16x2xf32>, vector<1x2xf32> -> vector<1x2xf32>
      %c0_37 = arith.constant 0 : index
      %c0_38 = arith.constant 0 : index
      %77 = vector.load %arg9[%c0_37, %c0_38] : memref<1x1xf32, #tpu.memory_space<vmem>>, vector<1x1xf32>
      %78 = vector.broadcast %77 : vector<1x1xf32> to vector<1x2xf32>
      %79 = arith.addf %76, %78 : vector<1x2xf32>
      %cst_39 = arith.constant 0.000000e+00 : f32
      %80 = vector.broadcast %cst_39 : f32 to vector<1x2xf32>
      %81 = arith.cmpf oge, %79, %80 : vector<1x2xf32>
      %cst_40 = arith.constant 0.00999999977 : f32
      %82 = vector.broadcast %cst_40 : f32 to vector<1x2xf32>
      %83 = arith.mulf %82, %79 : vector<1x2xf32>
      %84 = arith.select %81, %79, %83 : vector<1x2xi1>, vector<1x2xf32>
      %c0_41 = arith.constant 0 : index
      %c0_42 = arith.constant 0 : index
      %85 = vector.load %arg10[%c0_41, %c0_42] : memref<1x2xf32, #tpu.memory_space<vmem>>, vector<1x2xf32>
      tpu.vector_store %arg10[%c0_41, %c0_42], %84 {strides = array<i32>} : memref<1x2xf32, #tpu.memory_space<vmem>>, vector<1x2xf32>,
    } else {
    }
    return
  }
  func.func @transform_0(%arg0: i32) -> (i32, i32) {
    %c0_i32 = arith.constant 0 : i32
    %c0_i32_0 = arith.constant 0 : i32
    return %c0_i32, %arg0 : i32, i32
  }
  func.func @transform_1(%arg0: i32) -> (i32, i32) {
    %c0_i32 = arith.constant 0 : i32
    %c0_i32_0 = arith.constant 0 : i32
    return %arg0, %c0_i32 : i32, i32
  }
  func.func @transform_2(%arg0: i32) -> (i32, i32) {
    %c0_i32 = arith.constant 0 : i32
    %c0_i32_0 = arith.constant 0 : i32
    %c0_i32_1 = arith.constant 0 : i32
    return %c0_i32, %c0_i32_0 : i32, i32
  }
  func.func @transform_3(%arg0: i32) -> (i32, i32) {
    %c0_i32 = arith.constant 0 : i32
    %c0_i32_0 = arith.constant 0 : i32
    %c0_i32_1 = arith.constant 0 : i32
    return %c0_i32, %c0_i32_0 : i32, i32
  }
  func.func @transform_4(%arg0: i32) -> (i32, i32) {
    %c0_i32 = arith.constant 0 : i32
    %c0_i32_0 = arith.constant 0 : i32
    %c0_i32_1 = arith.constant 0 : i32
    return %c0_i32, %c0_i32_0 : i32, i32
  }
  func.func @transform_5(%arg0: i32) -> (i32, i32) {
    %c0_i32 = arith.constant 0 : i32
    %c0_i32_0 = arith.constant 0 : i32
    %c0_i32_1 = arith.constant 0 : i32
    return %c0_i32, %c0_i32_0 : i32, i32
  }
  func.func @transform_6(%arg0: i32) -> (i32, i32) {
    %c0_i32 = arith.constant 0 : i32
    %c0_i32_0 = arith.constant 0 : i32
    %c0_i32_1 = arith.constant 0 : i32
    return %c0_i32, %c0_i32_0 : i32, i32
  }
  func.func @transform_7(%arg0: i32) -> (i32, i32) {
    %c0_i32 = arith.constant 0 : i32
    %c0_i32_0 = arith.constant 0 : i32
    %c0_i32_1 = arith.constant 0 : i32
    return %c0_i32, %c0_i32_0 : i32, i32
  }
  func.func @transform_8(%arg0: i32) -> (i32, i32) {
    %c0_i32 = arith.constant 0 : i32
    %c0_i32_0 = arith.constant 0 : i32
    %c0_i32_1 = arith.constant 0 : i32
    return %c0_i32, %c0_i32_0 : i32, i32
  }
  func.func @transform_9(%arg0: i32) -> (i32, i32) {
    %c0_i32 = arith.constant 0 : i32
    %c0_i32_0 = arith.constant 0 : i32
    %c0_i32_1 = arith.constant 0 : i32
    return %c0_i32, %c0_i32_0 : i32, i32
  }
}

</mosaic_0001>

<bundles_post_ra>
// kernel: tpu_custom_call.1
= control target key start
LH: loop header
LB: loop body
LE: loop exit
PB: predicated region body
PF: predicated region fallthrough
CT: control target
= control target key end

     0   :  { %s468_s0 = inlined_call_operand.vmem [shape: bf16[1,16], index: 0, kind: input, shape index: {}]   ;;  %s469_s1 = inlined_call_operand.vmem [shape: bf16[16,16], index: 1, kind: input, shape index: {}]   ;;  %s470_s2 = inlined_call_operand.vmem [shape: f32[5,1], index: 2, kind: input, shape index: {}]   ;;  %s471_s3 = inlined_call_operand.vmem [shape: f32[5,1], index: 3, kind: input, shape index: {}]   ;;  %s472_s4 = inlined_call_operand.vmem [shape: f32[5,1], index: 4, kind: input, shape index: {}]   ;;  %s473_s5 = inlined_call_operand.vmem [shape: f32[5,1], index: 5, kind: input, shape index: {}]   ;;  %s474_s6 = inlined_call_operand.<no memory space> [shape: f32[1,1], index: 6, kind: input, shape index: {}]   ;;  %s475_s7 = inlined_call_operand.vmem [shape: f32[1,16], index: 7, kind: input, shape index: {}]   ;;  %s476_s9 = inlined_call_operand.hbm [shape: f32[1,2], index: 9, kind: output, shape index: {}]   ;;  %s477_s8 = inlined_call_operand.<no memory space> [shape: f32[1,1], index: 8, kind: input, shape index: {}]  }
   0x1   :  { %v14_v0 = vstv %s474_s6  ;;  %v16_v1 = vstv %s477_s8 }
   0x2   :  { %15 = vst [vmem:[#allocation3] sm:$0x1] %v14_v0  ;;  %17 = vst [vmem:[#allocation4] sm:$0x1] %v16_v1 }
   0x3   :  { %vm42_vm0 = vcmask 122880   ;;  %v366_v2 = vmov 0.0   ;;  %v339_v3 = vld [vmem:[%s469_s1] sm:$0xff]   ;;  %vm367_vm1 = vmmov 0   ;;  %v368_v4 = vmov 0  }
   0x4   :  { %43 = vst.msk [vmem:[#allocation2] sm:$0x1] %vm42_vm0, %v366_v2  ;;  %315 = vmatprep.subr.bf16.mxu0 %v366_v2  ;;  %317 = vmatprep.mubr.msk.bf16.mxu0 %vm367_vm1, %v366_v2  ;;  %v105_v5 = vld [vmem:[%s470_s2] sm:$0x1f]  ;;  %vm54_vm2 = vcmask 130048  }
   0x5   :  { %337 = vset.pattern.permute.xlu0 %v368_v4  ;;  %v135_v6 = vld [vmem:[%s471_s3] sm:$0x1f]  ;;  %316 = vmatpush3.bf16.msra.mxu0 %v339_v3 }
   0x6   :  { %v45_v7 = vld [vmem:[%s468_s0] sm:$0x1]  ;;  %108 = vperm.xlu0 %337, %v105_v5  }
   0x7   :  { %18 = vsyncpa [#allocation6], 0  ;;  %338 = vset.pattern.permute.xlu1 %v368_v4  ;;  %325 = vmatprep.mubr.msk.f32.mxu1 %vm367_vm1, %v366_v2  ;;  %v142_v8 = vld [vmem:[%s472_s4] sm:$0x1f]  ;;  %vm118_vm3 = vcmask 126976   ;;  %v172_v24 = vlaneseq  ;;  %v369_v31 = vmov 0.0|0.0  }
   0x8   :  { %138 = vperm.xlu1 %338, %v135_v6   ;;  %318 = vmatmul.mubr.msk.bf16.vlgmr.msra.gmra.mrb[0].mxu0 %vm54_vm2, %v45_v7  ;;  %v152_v21 = vld [vmem:[%s473_s5] sm:$0x1f]  ;;  %v370_v32 = vmov 1.0|1.0   ;;  %s371_s5 = smov [#allocation5]   ;;  %vm286_vm14 = vcmask 8192  }
   0x9   :  { %v166_v22 = vld [vmem:[#allocation3] sm:$0x1]  ;;  %v200_v23 = vld [vmem:[#allocation4] sm:$0x1]  ;;  %v186_v25 = vand.u32 127, %v172_v24  ;;  %v173_v26 = vshrl.u32 %v172_v24, 7  ;;  %328 = vmatprep.subr.bf16.mxu1 %v369_v31 }
   0xa   :  { %v180_v0 = vld [vmem:[%s475_s7] sm:$0x1]  ;;  %s294_s20 = sshll.u32 %s371_s5, 4  ;;  %s295_s20 = int_to_ptr.vmem [resolvable:$true] %s294_s20 }
   0xb   :  { %v44_v9 = vld [vmem:[#allocation2] sm:$0x1]  ;;  %v190_v27 = vadd.s32 1, %v186_v25  ;;  %v184_v28 = vadd.s32 8, %v173_v26  ;;  %v187_v29 = vmul.u32 8, %v186_v25  ;;  %v174_v57 = vsub.s32 0, %v173_v26  ;;  %p347_p1 = scmp.lt.s32.totalorder %s295_s20, %s295_s20 }
   0xc   :  { %145 = vperm.xlu1 %338, %v142_v8   ;;  %s342_s21 = scalar_lea.vmem %s295_s20, 16  ;;  %s346_s7 = scalar_lea.vmem %s295_s20, 32 }
   0xd   :  { %v191_v30 = vmul.u32 8, %v190_v27  ;;  %vm188_vm4 = vcmp.ge.s32.totalorder %v173_v26, %v187_v29  ;;  %vm189_vm5 = vcmp.ge.s32.totalorder %v184_v28, %v187_v29  ;;  %p343_p0 = scmp.ne.s32.totalorder %s295_s20, %s342_s21  ;;  %p348_p2 = scmp.lt.s32.totalorder %s346_s7, %s342_s21 }
   0xf   :  { %vm192_vm6 = vcmp.lt.s32.totalorder %v173_v26, %v191_v30  ;;  %vm193_vm7 = vcmp.lt.s32.totalorder %v184_v28, %v191_v30  ;;  %p349_p3 = por %p348_p2, %p347_p1 }
  0x10   :  { %vm194_vm8 = vmand %vm188_vm4, %vm192_vm6 }
  0x11   :  { %vm195_vm9 = vmand %vm189_vm5, %vm193_vm7  ;;  %p350_p4 = pnand %p349_p3, %p343_p0 }
  0x12   :  { %vm329_vm10 = vmpackc.low %vm195_vm9, %vm194_vm8 }
  0x13   :  { %330 = vmatpush3.bf16.msk.msra.mxu1 %vm329_vm10, %v370_v32 }
  0x85   :  { %v109_v15 = vpop.permute.xlu0 %108 }
  0x87   :  { %v139_v33 = vpop.permute.xlu1 %138 }
  0x8b   :  { %v146_v34 = vpop.permute.xlu1 %145 }
  0xdb   :  { %v92_v10 = vpop.f32.mrb[0].mxu0 }
  0xdc   :  { %v98_v11 = vadd.f32 %v92_v10, %v44_v9  ;;  %v319_v12 = vpop.f32.mrb[1].mxu0 }
  0xdd   :  { %v95_v13 = vpop.f32.mrb[2].mxu0 }
  0xde   :  { %100 = vst.msk [vmem:[#allocation2] sm:$0x1] %vm42_vm0, %v98_v11  ;;  %v320_v14 = vpop.f32.mrb[3].mxu0 }
  0xe5   :  { %v304_v16 = vld [vmem:[#allocation2] ss:$0 sm:$0xff] }
  0xe6   :  { %v117_v17 = vmul.f32 %v304_v16, %v109_v15 }
  0xe8   :  { %v119_v18 = vsel %vm118_vm3, %v117_v17, 0.0  ;;  %v123_v19 = vmul.f32 %v117_v17, %v117_v17 }
  0xe9   :  { %120 = vadd.xlane.f32.xlu0 %v119_v18 }
  0xea   :  { %v124_v20 = vsel %vm118_vm3, %v123_v19, 0.0 }
  0xeb   :  { %125 = vadd.xlane.f32.xlu1 %v124_v20 }
  0xfc   :  { %155 = vperm.xlu1 %338, %v152_v21  }
 0x100   :  { %169 = vperm.xlu1 %338, %v166_v22  }
 0x104   :  { %203 = vperm.xlu1 %338, %v200_v23  }
 0x176   :  { %v121_v35 = vpop.xlane.xlu0 %120 }
 0x177   :  { %v122_v36 = vmul.f32 0.0625, %v121_v35 }
 0x178   :  { %v126_v37 = vpop.xlane.xlu1 %125 }
 0x179   :  { %v128_v38 = vmul.f32 %v122_v36, %v122_v36  ;;  %v127_v39 = vmul.f32 0.0625, %v126_v37  ;;  %v131_v43 = vsub.f32 %v117_v17, %v122_v36 }
 0x17b   :  { %v129_v40 = vsub.f32 %v127_v39, %v128_v38 }
 0x17c   :  { %v156_v49 = vpop.permute.xlu1 %155 }
 0x17d   :  { %v130_v41 = vmax.f32 %v129_v40, 0.0 }
 0x17f   :  { %v132_v42 = vadd.f32 1e-05, %v130_v41 }
 0x180   :  { %v170_v58 = vpop.permute.xlu1 %169 }
 0x181   :  { %340 = vrsqrt.f32 %v132_v42  ;;  %v175_v61 = vrot.slane %v170_v58, %v174_v57 }
 0x184   :  { %v204_v3 = vpop.permute.xlu1 %203 }
 0x185   :  { %v209_v4 = vrot.slane %v204_v3, %v174_v57 }
 0x18b   :  { %v341_v44 = vpop.eup %340 }
 0x18c   :  { %v134_v45 = vmul.f32 %v341_v44, %v131_v43 }
 0x18e   :  { %v141_v46 = vmul.f32 %v139_v33, %v134_v45 }
 0x190   :  { %v148_v47 = vadd.f32 %v146_v34, %v141_v46 }
 0x192   :  { %vm149_vm11 = vcmp.ge.f32.partialorder %v148_v47, 0.0  ;;  %v150_v48 = vmul.f32 0.01, %v148_v47 }
 0x194   :  { %v151_v50 = vsel %vm149_vm11, %v148_v47, %v150_v48 }
 0x195   :  { %v158_v51 = vmul.f32 %v156_v49, %v151_v50 }
 0x197   :  { %v159_v52 = vsel %vm118_vm3, %v158_v51, 0.0 }
 0x198   :  { %v160_v53 = vrot.slane %v159_v52, 4 }
 0x19a   :  { %v161_v54 = vadd.f32 %v160_v53, %v159_v52 }
 0x19c   :  { %v162_v55 = vrot.slane %v161_v54, 2 }
 0x19e   :  { %v163_v56 = vadd.f32 %v162_v55, %v161_v54 }
 0x1a0   :  { %v164_v59 = vrot.slane %v163_v56, 1 }
 0x1a2   :  { %v165_v60 = vadd.f32 %v164_v59, %v163_v56 }
 0x1a4   :  { %v176_v62 = vadd.f32 %v175_v61, %v165_v60 }
 0x1a6   :  { %vm177_vm12 = vcmp.ge.f32.partialorder %v176_v62, 0.0  ;;  %v178_v63 = vmul.f32 0.01, %v176_v62 }
 0x1a8   :  { %v179_v1 = vsel %vm177_vm12, %v176_v62, %v178_v63 }
 0x1a9   :  { %v181_v2 = vmul.f32 %v180_v0, %v179_v1 }
 0x1ab   :  { %326 = vmatmul.mubr.msk.f32.vlgmr.msra.gmra.mrb[0].mxu1 %vm54_vm2, %v181_v2 }
 0x27e   :  { %v279_v5 = vpop.f32.mrb[0].mxu1 }
 0x27f   :  { %v280_v6 = vadd.f32 %v279_v5, %v209_v4  ;;  %v327_v7 = vpop.f32.mrb[1].mxu1 }
 0x281   :  { %v284_v8 = vmul.f32 0.01, %v280_v6  ;;  %vm283_vm13 = vcmp.ge.f32.partialorder %v280_v6, 0.0 }
 0x283   :  { %v285_v9 = vsel %vm283_vm13, %v280_v6, %v284_v8 }
 0x284   :  { %287 = vst.msk [vmem:[#allocation5] sm:$0x1] %vm286_vm14, %v285_v9 }
 0x285   :  { %353 = shalt.err (!%p350_p4)
}
 0x286   :  { %s354_s24 = scalar_lea.hbm %s476_s9, 16 }
 0x287   :  { %p355_p5 = scmp.ne.s32.totalorder %s476_s9, %s354_s24  ;;  %p358_p6 = scmp.lt.u32.totalorder %s354_s24, %s476_s9 }
 0x289   :  { %p360_p7 = pnand %p358_p6, %p355_p5 }
 0x28b   :  { %363 = shalt.err (!%p360_p7)
}
 0x28c   :  { %297 = dma.vmem_to_hbm [thread:$0]  %s295_s20, 16, %s476_s9, [#allocation6]  }
 0x28d   :  { %364 = dma.done.wait [#allocation6], 16  }
 0x28e   :  { %365 = vsyncadd [#allocation6], 4294967280 }
 0x28f   :  { %301 = vsyncpa [#allocation6], 1 }

</bundles_post_ra>
